<compile_context>
chip_gen: v7x
topology: tpu7x:2x2x1
jax: 0.10.0
libtpu: 0.0.40
codegen_flags: <defaults>
</compile_context>

<pallas_src>
import jax
import jax.numpy as jnp
from jax.experimental import pallas as pl
from jax.experimental.pallas import tpu as pltpu


def _make_attention_fusion_kernel(n_inputs, channels):
    def kernel(w_ref, *refs):
        # w_ref : SMEM (C,) f32 -- 1x1-conv weight (bias omitted: softmax over
        #         the stacked-input axis is shift-invariant).
        # refs  : n_inputs input VMEM blocks of shape (C, Rt, L), then the
        #         output VMEM block of shape (C, Rt, L).
        x_refs = refs[:n_inputs]
        o_ref = refs[n_inputs]

        # Hoist the C SMEM scalar weight reads (once per grid step).
        w = [w_ref[c] for c in range(channels)]

        # 1x1 conv == per-pixel dot over channels.  Unrolled VPU accumulation
        # streaming channel slices straight from the resident VMEM blocks --
        # nothing (C, Rt, L)-sized is kept live in f32, so no spill pressure
        # on the scarce vst slot (vld has slack).
        # TODO(synk): for large feature_dim (C >= 128) an MXU matmul
        # (1,C)x(C, T) with preferred_element_type=f32 would beat this unroll.
        scores = []
        for n in range(n_inputs):
            s = x_refs[n][0].astype(jnp.float32) * w[0]
            for c in range(1, channels):
                s = s + x_refs[n][c].astype(jnp.float32) * w[c]
            scores.append(s)                                     # (Rt, L)

        # Numerically-stable softmax over the stacked-input axis.
        m = scores[0]
        for n in range(1, n_inputs):
            m = jnp.maximum(m, scores[n])
        exps = [jnp.exp(scores[n] - m) for n in range(n_inputs)]
        denom = exps[0]
        for n in range(1, n_inputs):
            denom = denom + exps[n]
        # Exact reciprocal: the kernel is HBM-bound so the extra work is fully
        # hidden, and it matches PyTorch's exact softmax normalization.
        inv = pl.reciprocal(denom, approx=False)
        wts = [exps[n] * inv for n in range(n_inputs)]

        # TODO(synk): F.dropout on the softmax weights is omitted -- the module
        # is evaluated in eval mode (dropout is identity).

        # Weighted sum, one output channel at a time.  Channel slices are
        # re-loaded from VMEM (effectively free) instead of keeping full f32
        # copies of every input live.
        for c in range(channels):
            acc = wts[0] * x_refs[0][c].astype(jnp.float32)
            for n in range(1, n_inputs):
                acc = acc + wts[n] * x_refs[n][c].astype(jnp.float32)
            o_ref[c] = acc.astype(o_ref.dtype)

    return kernel


def _pick_unit_tile(total_units, granularity, batch, unit_bytes, budget):
    """Tile size in 128-lane units: a multiple of `granularity` (or the full
    extent), sized to the generation-aware VMEM budget, with enough grid steps
    for 2-TensorCore sharding only when there is enough work to go around."""
    if total_units <= granularity or total_units * unit_bytes <= budget:
        tile = total_units                       # full extent (always legal)
    else:
        tile = max(granularity, (total_units // granularity) * granularity)
        while tile > granularity and tile * unit_bytes > budget:
            tile = max(granularity, ((tile // 2) // granularity) * granularity)

    # Prefer >= 8 grid steps (v7x shards "parallel" axes over its 2 TCs), but
    # never shrink per-step work below ~512 units (~HBM-roofline knee) just to
    # manufacture steps -- per-step overhead (~0.35us) would dominate instead.
    min_units = max(granularity, 512)
    while batch * pl.cdiv(total_units, tile) < 8 and tile > min_units:
        new_tile = max(min_units, ((tile // 2) // granularity) * granularity)
        if new_tile >= tile:
            break
        tile = new_tile
    return tile


def attention_fusion(inputs, weight, bias=None):
    """inputs: list of (B, C, H, W) arrays.  weight: (1, C, 1, 1).  bias: (1,)
    (unused inside the kernel: a shared bias is a softmax no-op over the
    stacked-input axis)."""
    del bias  # mathematically a no-op under softmax over the input axis
    n_inputs = len(inputs)
    B, C, H, W = inputs[0].shape
    HW = H * W
    itemsize = jnp.dtype(inputs[0].dtype).itemsize

    # Generation-aware VMEM sizing (v5e/v6e: 128 MiB physical, v7x: 64 MiB).
    try:
        vmem_cap = int(getattr(pltpu.get_tpu_info(), "vmem_capacity_bytes",
                               128 << 20))
    except Exception:  # conservative fallback if the query is unavailable
        vmem_cap = 128 << 20
    budget = min(32 << 20, vmem_cap // 4)                # ~32 MiB v5e/v6e, ~16 MiB v7x
    vmem_limit = int(min(64 << 20, (3 * vmem_cap) // 4))  # 64 MiB v5e/v6e, 48 MiB v7x

    # Bytes per 128-lane unit: double-buffered (N inputs + 1 output) blocks plus
    # the f32 softmax intermediates (scores / exps / weights / acc) live in a
    # step.  Keeps the real footprint under vmem_limit on every generation.
    unit_bytes = (2 * (n_inputs + 1) * C * 128 * itemsize
                  + (2 * n_inputs + 4) * 128 * 4)

    if HW % 128 == 0:
        # Lane-dense (rows, 128) layout; tile the sublane (row) axis.
        rows, lane = HW // 128, 128
        rt = _pick_unit_tile(rows, 8, B, unit_bytes, budget)
        xs = [xi.reshape(B, C, rows, lane) for xi in inputs]
        grid = (B, pl.cdiv(rows, rt))
        block = (None, C, rt, lane)
        index_map = lambda b, r: (b, 0, r, 0)
        packed_shape = (B, C, rows, lane)
    else:
        # Flatten spatial and tile the lane axis in 128-multiples via a cdiv
        # grid; only the tail block is masked (softmax is per-pixel, so garbage
        # in the masked tail cannot contaminate valid pixels).
        units = pl.cdiv(HW, 128)
        ut = _pick_unit_tile(units, 1, B, unit_bytes, budget)
        lt = HW if ut >= units else ut * 128
        xs = [xi.reshape(B, C, 1, HW) for xi in inputs]
        grid = (B, pl.cdiv(HW, lt))
        block = (None, C, 1, lt)
        index_map = lambda b, r: (b, 0, 0, r)
        packed_shape = (B, C, 1, HW)

    x_spec = pl.BlockSpec(block, index_map)
    out_spec = pl.BlockSpec(block, index_map)
    w = weight.reshape(C).astype(jnp.float32)

    out = pl.pallas_call(
        _make_attention_fusion_kernel(n_inputs, C),
        out_shape=jax.ShapeDtypeStruct(packed_shape, inputs[0].dtype),
        grid=grid,
        in_specs=[pl.BlockSpec(memory_space=pltpu.MemorySpace.SMEM)]  # conv weight
        + [x_spec] * n_inputs,
        out_specs=out_spec,
        compiler_params=pltpu.CompilerParams(
            dimension_semantics=("parallel", "parallel"),
            vmem_limit_bytes=vmem_limit,
        ),
    )(w, *xs)

    return out.reshape(B, C, H, W)


def attention_fusion_reference(inputs, weight, bias):
    """Pure-JAX NCHW reference matching the PyTorch forward (eval mode)."""
    w = weight.reshape(-1)                                 # (C,)
    scores = jnp.stack(
        [jnp.einsum("bchw,c->bhw", x, w) + bias[0] for x in inputs], axis=0
    )[:, :, None, :, :]                                    # (N, B, 1, H, W)
    wts = jax.nn.softmax(scores, axis=0)
    out = 0.0
    for i, x in enumerate(inputs):
        out = out + wts[i] * x
    return out


if __name__ == "__main__":
    key = jax.random.PRNGKey(0)
    B, C, H, W = 2, 4, 16, 16
    N_INPUTS = 3

    keys = jax.random.split(key, N_INPUTS + 2)
    inputs = [
        jax.random.normal(keys[i], (B, C, H, W), dtype=jnp.float32)
        for i in range(N_INPUTS)
    ]
    # Conv2d(feature_dim, 1, kernel_size=1): weight (1, C, 1, 1), bias (1,)
    weight = jax.random.normal(keys[-2], (1, C, 1, 1), dtype=jnp.float32) * 0.5
    bias = jax.random.normal(keys[-1], (1,), dtype=jnp.float32) * 0.1

    out = jax.block_until_ready(attention_fusion(inputs, weight, bias))
    ref = jax.block_until_ready(attention_fusion_reference(inputs, weight, bias))

    assert out.shape == (B, C, H, W), out.shape
    err = float(jnp.max(jnp.abs(out - ref)))
    assert err < 1e-4, err
    print("KERNEL_OK")
</pallas_src>

<mosaic_0001>
module attributes {stable_mosaic.version = 11 : i64} {
  func.func @kernel(%arg0: i32, %arg1: i32, %arg2: memref<4xf32, #tpu.memory_space<smem>>, %arg3: memref<1x4x2x128xf32, #tpu.memory_space<vmem>>, %arg4: memref<1x4x2x128xf32, #tpu.memory_space<vmem>>, %arg5: memref<1x4x2x128xf32, #tpu.memory_space<vmem>>, %arg6: memref<1x4x2x128xf32, #tpu.memory_space<vmem>>) attributes {dimension_semantics = [#tpu.dimension_semantics<parallel>, #tpu.dimension_semantics<parallel>], iteration_bounds = array<i64: 2, 1>, scalar_prefetch = 0 : i64, scratch_operands = 0 : i64, tpu.core_type = #tpu.core_type<tc>, window_params = [{transform_indices = @transform_0, window_bounds = array<i64: 4>}, {transform_indices = @transform_1, window_bounds = array<i64: 1, 4, 2, 128>}, {transform_indices = @transform_2, window_bounds = array<i64: 1, 4, 2, 128>}, {transform_indices = @transform_3, window_bounds = array<i64: 1, 4, 2, 128>}, {transform_indices = @transform_4, window_bounds = array<i64: 1, 4, 2, 128>}]} {
    %c0 = arith.constant 0 : index
    %0 = memref.load %arg2[%c0] : memref<4xf32, #tpu.memory_space<smem>>
    %c1 = arith.constant 1 : index
    %1 = memref.load %arg2[%c1] : memref<4xf32, #tpu.memory_space<smem>>
    %c2 = arith.constant 2 : index
    %2 = memref.load %arg2[%c2] : memref<4xf32, #tpu.memory_space<smem>>
    %c3 = arith.constant 3 : index
    %3 = memref.load %arg2[%c3] : memref<4xf32, #tpu.memory_space<smem>>
    %c0_0 = arith.constant 0 : index
    %c0_1 = arith.constant 0 : index
    %c0_2 = arith.constant 0 : index
    %c0_3 = arith.constant 0 : index
    %4 = vector.load %arg3[%c0_0, %c0_1, %c0_2, %c0_3] : memref<1x4x2x128xf32, #tpu.memory_space<vmem>>, vector<1x1x2x128xf32>
    %5 = vector.shape_cast %4 : vector<1x1x2x128xf32> to vector<2x128xf32>
    %6 = vector.broadcast %0 : f32 to vector<2x128xf32>
    %7 = arith.mulf %5, %6 : vector<2x128xf32>
    %c0_4 = arith.constant 0 : index
    %c1_5 = arith.constant 1 : index
    %c0_6 = arith.constant 0 : index
    %c0_7 = arith.constant 0 : index
    %8 = vector.load %arg3[%c0_4, %c1_5, %c0_6, %c0_7] : memref<1x4x2x128xf32, #tpu.memory_space<vmem>>, vector<1x1x2x128xf32>
    %9 = vector.shape_cast %8 : vector<1x1x2x128xf32> to vector<2x128xf32>
    %10 = vector.broadcast %1 : f32 to vector<2x128xf32>
    %11 = arith.mulf %9, %10 : vector<2x128xf32>
    %12 = arith.addf %7, %11 : vector<2x128xf32>
    %c0_8 = arith.constant 0 : index
    %c2_9 = arith.constant 2 : index
    %c0_10 = arith.constant 0 : index
    %c0_11 = arith.constant 0 : index
    %13 = vector.load %arg3[%c0_8, %c2_9, %c0_10, %c0_11] : memref<1x4x2x128xf32, #tpu.memory_space<vmem>>, vector<1x1x2x128xf32>
    %14 = vector.shape_cast %13 : vector<1x1x2x128xf32> to vector<2x128xf32>
    %15 = vector.broadcast %2 : f32 to vector<2x128xf32>
    %16 = arith.mulf %14, %15 : vector<2x128xf32>
    %17 = arith.addf %12, %16 : vector<2x128xf32>
    %c0_12 = arith.constant 0 : index
    %c3_13 = arith.constant 3 : index
    %c0_14 = arith.constant 0 : index
    %c0_15 = arith.constant 0 : index
    %18 = vector.load %arg3[%c0_12, %c3_13, %c0_14, %c0_15] : memref<1x4x2x128xf32, #tpu.memory_space<vmem>>, vector<1x1x2x128xf32>
    %19 = vector.shape_cast %18 : vector<1x1x2x128xf32> to vector<2x128xf32>
    %20 = vector.broadcast %3 : f32 to vector<2x128xf32>
    %21 = arith.mulf %19, %20 : vector<2x128xf32>
    %22 = arith.addf %17, %21 : vector<2x128xf32>
    %c0_16 = arith.constant 0 : index
    %c0_17 = arith.constant 0 : index
    %c0_18 = arith.constant 0 : index
    %c0_19 = arith.constant 0 : index
    %23 = vector.load %arg4[%c0_16, %c0_17, %c0_18, %c0_19] : memref<1x4x2x128xf32, #tpu.memory_space<vmem>>, vector<1x1x2x128xf32>
    %24 = vector.shape_cast %23 : vector<1x1x2x128xf32> to vector<2x128xf32>
    %25 = vector.broadcast %0 : f32 to vector<2x128xf32>
    %26 = arith.mulf %24, %25 : vector<2x128xf32>
    %c0_20 = arith.constant 0 : index
    %c1_21 = arith.constant 1 : index
    %c0_22 = arith.constant 0 : index
    %c0_23 = arith.constant 0 : index
    %27 = vector.load %arg4[%c0_20, %c1_21, %c0_22, %c0_23] : memref<1x4x2x128xf32, #tpu.memory_space<vmem>>, vector<1x1x2x128xf32>
    %28 = vector.shape_cast %27 : vector<1x1x2x128xf32> to vector<2x128xf32>
    %29 = vector.broadcast %1 : f32 to vector<2x128xf32>
    %30 = arith.mulf %28, %29 : vector<2x128xf32>
    %31 = arith.addf %26, %30 : vector<2x128xf32>
    %c0_24 = arith.constant 0 : index
    %c2_25 = arith.constant 2 : index
    %c0_26 = arith.constant 0 : index
    %c0_27 = arith.constant 0 : index
    %32 = vector.load %arg4[%c0_24, %c2_25, %c0_26, %c0_27] : memref<1x4x2x128xf32, #tpu.memory_space<vmem>>, vector<1x1x2x128xf32>
    %33 = vector.shape_cast %32 : vector<1x1x2x128xf32> to vector<2x128xf32>
    %34 = vector.broadcast %2 : f32 to vector<2x128xf32>
    %35 = arith.mulf %33, %34 : vector<2x128xf32>
    %36 = arith.addf %31, %35 : vector<2x128xf32>
    %c0_28 = arith.constant 0 : index
    %c3_29 = arith.constant 3 : index
    %c0_30 = arith.constant 0 : index
    %c0_31 = arith.constant 0 : index
    %37 = vector.load %arg4[%c0_28, %c3_29, %c0_30, %c0_31] : memref<1x4x2x128xf32, #tpu.memory_space<vmem>>, vector<1x1x2x128xf32>
    %38 = vector.shape_cast %37 : vector<1x1x2x128xf32> to vector<2x128xf32>
    %39 = vector.broadcast %3 : f32 to vector<2x128xf32>
    %40 = arith.mulf %38, %39 : vector<2x128xf32>
    %41 = arith.addf %36, %40 : vector<2x128xf32>
    %c0_32 = arith.constant 0 : index
    %c0_33 = arith.constant 0 : index
    %c0_34 = arith.constant 0 : index
    %c0_35 = arith.constant 0 : index
    %42 = vector.load %arg5[%c0_32, %c0_33, %c0_34, %c0_35] : memref<1x4x2x128xf32, #tpu.memory_space<vmem>>, vector<1x1x2x128xf32>
    %43 = vector.shape_cast %42 : vector<1x1x2x128xf32> to vector<2x128xf32>
    %44 = vector.broadcast %0 : f32 to vector<2x128xf32>
    %45 = arith.mulf %43, %44 : vector<2x128xf32>
    %c0_36 = arith.constant 0 : index
    %c1_37 = arith.constant 1 : index
    %c0_38 = arith.constant 0 : index
    %c0_39 = arith.constant 0 : index
    %46 = vector.load %arg5[%c0_36, %c1_37, %c0_38, %c0_39] : memref<1x4x2x128xf32, #tpu.memory_space<vmem>>, vector<1x1x2x128xf32>
    %47 = vector.shape_cast %46 : vector<1x1x2x128xf32> to vector<2x128xf32>
    %48 = vector.broadcast %1 : f32 to vector<2x128xf32>
    %49 = arith.mulf %47, %48 : vector<2x128xf32>
    %50 = arith.addf %45, %49 : vector<2x128xf32>
    %c0_40 = arith.constant 0 : index
    %c2_41 = arith.constant 2 : index
    %c0_42 = arith.constant 0 : index
    %c0_43 = arith.constant 0 : index
    %51 = vector.load %arg5[%c0_40, %c2_41, %c0_42, %c0_43] : memref<1x4x2x128xf32, #tpu.memory_space<vmem>>, vector<1x1x2x128xf32>
    %52 = vector.shape_cast %51 : vector<1x1x2x128xf32> to vector<2x128xf32>
    %53 = vector.broadcast %2 : f32 to vector<2x128xf32>
    %54 = arith.mulf %52, %53 : vector<2x128xf32>
    %55 = arith.addf %50, %54 : vector<2x128xf32>
    %c0_44 = arith.constant 0 : index
    %c3_45 = arith.constant 3 : index
    %c0_46 = arith.constant 0 : index
    %c0_47 = arith.constant 0 : index
    %56 = vector.load %arg5[%c0_44, %c3_45, %c0_46, %c0_47] : memref<1x4x2x128xf32, #tpu.memory_space<vmem>>, vector<1x1x2x128xf32>
    %57 = vector.shape_cast %56 : vector<1x1x2x128xf32> to vector<2x128xf32>
    %58 = vector.broadcast %3 : f32 to vector<2x128xf32>
    %59 = arith.mulf %57, %58 : vector<2x128xf32>
    %60 = arith.addf %55, %59 : vector<2x128xf32>
    %61 = arith.maximumf %22, %41 : vector<2x128xf32>
    %62 = arith.maximumf %61, %60 : vector<2x128xf32>
    %63 = arith.subf %22, %62 : vector<2x128xf32>
    %64 = math.exp %63 : vector<2x128xf32>
    %65 = arith.subf %41, %62 : vector<2x128xf32>
    %66 = math.exp %65 : vector<2x128xf32>
    %67 = arith.subf %60, %62 : vector<2x128xf32>
    %68 = math.exp %67 : vector<2x128xf32>
    %69 = arith.addf %64, %66 : vector<2x128xf32>
    %70 = arith.addf %69, %68 : vector<2x128xf32>
    %71 = tpu.reciprocal %70 : vector<2x128xf32> -> vector<2x128xf32>
    %72 = arith.mulf %64, %71 : vector<2x128xf32>
    %73 = arith.mulf %66, %71 : vector<2x128xf32>
    %74 = arith.mulf %68, %71 : vector<2x128xf32>
    %c0_48 = arith.constant 0 : index
    %c0_49 = arith.constant 0 : index
    %c0_50 = arith.constant 0 : index
    %c0_51 = arith.constant 0 : index
    %75 = vector.load %arg3[%c0_48, %c0_49, %c0_50, %c0_51] : memref<1x4x2x128xf32, #tpu.memory_space<vmem>>, vector<1x1x2x128xf32>
    %76 = vector.shape_cast %75 : vector<1x1x2x128xf32> to vector<2x128xf32>
    %77 = arith.mulf %72, %76 : vector<2x128xf32>
    %c0_52 = arith.constant 0 : index
    %c0_53 = arith.constant 0 : index
    %c0_54 = arith.constant 0 : index
    %c0_55 = arith.constant 0 : index
    %78 = vector.load %arg4[%c0_52, %c0_53, %c0_54, %c0_55] : memref<1x4x2x128xf32, #tpu.memory_space<vmem>>, vector<1x1x2x128xf32>
    %79 = vector.shape_cast %78 : vector<1x1x2x128xf32> to vector<2x128xf32>
    %80 = arith.mulf %73, %79 : vector<2x128xf32>
    %81 = arith.addf %77, %80 : vector<2x128xf32>
    %c0_56 = arith.constant 0 : index
    %c0_57 = arith.constant 0 : index
    %c0_58 = arith.constant 0 : index
    %c0_59 = arith.constant 0 : index
    %82 = vector.load %arg5[%c0_56, %c0_57, %c0_58, %c0_59] : memref<1x4x2x128xf32, #tpu.memory_space<vmem>>, vector<1x1x2x128xf32>
    %83 = vector.shape_cast %82 : vector<1x1x2x128xf32> to vector<2x128xf32>
    %84 = arith.mulf %74, %83 : vector<2x128xf32>
    %85 = arith.addf %81, %84 : vector<2x128xf32>
    %c0_60 = arith.constant 0 : index
    %c0_61 = arith.constant 0 : index
    %c0_62 = arith.constant 0 : index
    %c0_63 = arith.constant 0 : index
    %86 = vector.load %arg6[%c0_60, %c0_61, %c0_62, %c0_63] : memref<1x4x2x128xf32, #tpu.memory_space<vmem>>, vector<1x1x2x128xf32>
    %87 = vector.shape_cast %86 : vector<1x1x2x128xf32> to vector<2x128xf32>
    %88 = vector.shape_cast %85 : vector<2x128xf32> to vector<1x1x2x128xf32>
    tpu.vector_store %arg6[%c0_60, %c0_61, %c0_62, %c0_63], %88 {strides = array<i32>} : memref<1x4x2x128xf32, #tpu.memory_space<vmem>>, vector<1x1x2x128xf32>,
    %c0_64 = arith.constant 0 : index
    %c1_65 = arith.constant 1 : index
    %c0_66 = arith.constant 0 : index
    %c0_67 = arith.constant 0 : index
    %89 = vector.load %arg3[%c0_64, %c1_65, %c0_66, %c0_67] : memref<1x4x2x128xf32, #tpu.memory_space<vmem>>, vector<1x1x2x128xf32>
    %90 = vector.shape_cast %89 : vector<1x1x2x128xf32> to vector<2x128xf32>
    %91 = arith.mulf %72, %90 : vector<2x128xf32>
    %c0_68 = arith.constant 0 : index
    %c1_69 = arith.constant 1 : index
    %c0_70 = arith.constant 0 : index
    %c0_71 = arith.constant 0 : index
    %92 = vector.load %arg4[%c0_68, %c1_69, %c0_70, %c0_71] : memref<1x4x2x128xf32, #tpu.memory_space<vmem>>, vector<1x1x2x128xf32>
    %93 = vector.shape_cast %92 : vector<1x1x2x128xf32> to vector<2x128xf32>
    %94 = arith.mulf %73, %93 : vector<2x128xf32>
    %95 = arith.addf %91, %94 : vector<2x128xf32>
    %c0_72 = arith.constant 0 : index
    %c1_73 = arith.constant 1 : index
    %c0_74 = arith.constant 0 : index
    %c0_75 = arith.constant 0 : index
    %96 = vector.load %arg5[%c0_72, %c1_73, %c0_74, %c0_75] : memref<1x4x2x128xf32, #tpu.memory_space<vmem>>, vector<1x1x2x128xf32>
    %97 = vector.shape_cast %96 : vector<1x1x2x128xf32> to vector<2x128xf32>
    %98 = arith.mulf %74, %97 : vector<2x128xf32>
    %99 = arith.addf %95, %98 : vector<2x128xf32>
    %c0_76 = arith.constant 0 : index
    %c1_77 = arith.constant 1 : index
    %c0_78 = arith.constant 0 : index
    %c0_79 = arith.constant 0 : index
    %100 = vector.load %arg6[%c0_76, %c1_77, %c0_78, %c0_79] : memref<1x4x2x128xf32, #tpu.memory_space<vmem>>, vector<1x1x2x128xf32>
    %101 = vector.shape_cast %100 : vector<1x1x2x128xf32> to vector<2x128xf32>
    %102 = vector.shape_cast %99 : vector<2x128xf32> to vector<1x1x2x128xf32>
    tpu.vector_store %arg6[%c0_76, %c1_77, %c0_78, %c0_79], %102 {strides = array<i32>} : memref<1x4x2x128xf32, #tpu.memory_space<vmem>>, vector<1x1x2x128xf32>,
    %c0_80 = arith.constant 0 : index
    %c2_81 = arith.constant 2 : index
    %c0_82 = arith.constant 0 : index
    %c0_83 = arith.constant 0 : index
    %103 = vector.load %arg3[%c0_80, %c2_81, %c0_82, %c0_83] : memref<1x4x2x128xf32, #tpu.memory_space<vmem>>, vector<1x1x2x128xf32>
    %104 = vector.shape_cast %103 : vector<1x1x2x128xf32> to vector<2x128xf32>
    %105 = arith.mulf %72, %104 : vector<2x128xf32>
    %c0_84 = arith.constant 0 : index
    %c2_85 = arith.constant 2 : index
    %c0_86 = arith.constant 0 : index
    %c0_87 = arith.constant 0 : index
    %106 = vector.load %arg4[%c0_84, %c2_85, %c0_86, %c0_87] : memref<1x4x2x128xf32, #tpu.memory_space<vmem>>, vector<1x1x2x128xf32>
    %107 = vector.shape_cast %106 : vector<1x1x2x128xf32> to vector<2x128xf32>
    %108 = arith.mulf %73, %107 : vector<2x128xf32>
    %109 = arith.addf %105, %108 : vector<2x128xf32>
    %c0_88 = arith.constant 0 : index
    %c2_89 = arith.constant 2 : index
    %c0_90 = arith.constant 0 : index
    %c0_91 = arith.constant 0 : index
    %110 = vector.load %arg5[%c0_88, %c2_89, %c0_90, %c0_91] : memref<1x4x2x128xf32, #tpu.memory_space<vmem>>, vector<1x1x2x128xf32>
    %111 = vector.shape_cast %110 : vector<1x1x2x128xf32> to vector<2x128xf32>
    %112 = arith.mulf %74, %111 : vector<2x128xf32>
    %113 = arith.addf %109, %112 : vector<2x128xf32>
    %c0_92 = arith.constant 0 : index
    %c2_93 = arith.constant 2 : index
    %c0_94 = arith.constant 0 : index
    %c0_95 = arith.constant 0 : index
    %114 = vector.load %arg6[%c0_92, %c2_93, %c0_94, %c0_95] : memref<1x4x2x128xf32, #tpu.memory_space<vmem>>, vector<1x1x2x128xf32>
    %115 = vector.shape_cast %114 : vector<1x1x2x128xf32> to vector<2x128xf32>
    %116 = vector.shape_cast %113 : vector<2x128xf32> to vector<1x1x2x128xf32>
    tpu.vector_store %arg6[%c0_92, %c2_93, %c0_94, %c0_95], %116 {strides = array<i32>} : memref<1x4x2x128xf32, #tpu.memory_space<vmem>>, vector<1x1x2x128xf32>,
    %c0_96 = arith.constant 0 : index
    %c3_97 = arith.constant 3 : index
    %c0_98 = arith.constant 0 : index
    %c0_99 = arith.constant 0 : index
    %117 = vector.load %arg3[%c0_96, %c3_97, %c0_98, %c0_99] : memref<1x4x2x128xf32, #tpu.memory_space<vmem>>, vector<1x1x2x128xf32>
    %118 = vector.shape_cast %117 : vector<1x1x2x128xf32> to vector<2x128xf32>
    %119 = arith.mulf %72, %118 : vector<2x128xf32>
    %c0_100 = arith.constant 0 : index
    %c3_101 = arith.constant 3 : index
    %c0_102 = arith.constant 0 : index
    %c0_103 = arith.constant 0 : index
    %120 = vector.load %arg4[%c0_100, %c3_101, %c0_102, %c0_103] : memref<1x4x2x128xf32, #tpu.memory_space<vmem>>, vector<1x1x2x128xf32>
    %121 = vector.shape_cast %120 : vector<1x1x2x128xf32> to vector<2x128xf32>
    %122 = arith.mulf %73, %121 : vector<2x128xf32>
    %123 = arith.addf %119, %122 : vector<2x128xf32>
    %c0_104 = arith.constant 0 : index
    %c3_105 = arith.constant 3 : index
    %c0_106 = arith.constant 0 : index
    %c0_107 = arith.constant 0 : index
    %124 = vector.load %arg5[%c0_104, %c3_105, %c0_106, %c0_107] : memref<1x4x2x128xf32, #tpu.memory_space<vmem>>, vector<1x1x2x128xf32>
    %125 = vector.shape_cast %124 : vector<1x1x2x128xf32> to vector<2x128xf32>
    %126 = arith.mulf %74, %125 : vector<2x128xf32>
    %127 = arith.addf %123, %126 : vector<2x128xf32>
    %c0_108 = arith.constant 0 : index
    %c3_109 = arith.constant 3 : index
    %c0_110 = arith.constant 0 : index
    %c0_111 = arith.constant 0 : index
    %128 = vector.load %arg6[%c0_108, %c3_109, %c0_110, %c0_111] : memref<1x4x2x128xf32, #tpu.memory_space<vmem>>, vector<1x1x2x128xf32>
    %129 = vector.shape_cast %128 : vector<1x1x2x128xf32> to vector<2x128xf32>
    %130 = vector.shape_cast %127 : vector<2x128xf32> to vector<1x1x2x128xf32>
    tpu.vector_store %arg6[%c0_108, %c3_109, %c0_110, %c0_111], %130 {strides = array<i32>} : memref<1x4x2x128xf32, #tpu.memory_space<vmem>>, vector<1x1x2x128xf32>,
    return
  }
  func.func @transform_0(%arg0: i32, %arg1: i32) -> i32 {
    %c0_i32 = arith.constant 0 : i32
    %c0_i32_0 = arith.constant 0 : i32
    return %c0_i32 : i32
  }
  func.func @transform_1(%arg0: i32, %arg1: i32) -> (i32, i32, i32, i32) {
    %c0_i32 = arith.constant 0 : i32
    %c0_i32_0 = arith.constant 0 : i32
    %c0_i32_1 = arith.constant 0 : i32
    return %arg0, %c0_i32, %arg1, %c0_i32_0 : i32, i32, i32, i32
  }
  func.func @transform_2(%arg0: i32, %arg1: i32) -> (i32, i32, i32, i32) {
    %c0_i32 = arith.constant 0 : i32
    %c0_i32_0 = arith.constant 0 : i32
    %c0_i32_1 = arith.constant 0 : i32
    return %arg0, %c0_i32, %arg1, %c0_i32_0 : i32, i32, i32, i32
  }
  func.func @transform_3(%arg0: i32, %arg1: i32) -> (i32, i32, i32, i32) {
    %c0_i32 = arith.constant 0 : i32
    %c0_i32_0 = arith.constant 0 : i32
    %c0_i32_1 = arith.constant 0 : i32
    return %arg0, %c0_i32, %arg1, %c0_i32_0 : i32, i32, i32, i32
  }
  func.func @transform_4(%arg0: i32, %arg1: i32) -> (i32, i32, i32, i32) {
    %c0_i32 = arith.constant 0 : i32
    %c0_i32_0 = arith.constant 0 : i32
    %c0_i32_1 = arith.constant 0 : i32
    return %arg0, %c0_i32, %arg1, %c0_i32_0 : i32, i32, i32, i32
  }
}

</mosaic_0001>

<bundles_post_ra>
// kernel: tpu_custom_call.1
= control target key start
LH: loop header
LB: loop body
LE: loop exit
PB: predicated region body
PF: predicated region fallthrough
CT: control target
= control target key end

     0   :  { %s1312_s0 = inlined_call_operand.hbm [shape: f32[4], index: 0, kind: input, shape index: {}]   ;;  %s1313_s1 = inlined_call_operand.hbm [shape: f32[2,4,2,128], index: 1, kind: input, shape index: {}]   ;;  %s1314_s2 = inlined_call_operand.hbm [shape: f32[2,4,2,128], index: 2, kind: input, shape index: {}]   ;;  %s1315_s3 = inlined_call_operand.hbm [shape: f32[2,4,2,128], index: 3, kind: input, shape index: {}]   ;;  %s1316_s4 = inlined_call_operand.hbm [shape: f32[2,4,2,128], index: 4, kind: output, shape index: {}]  }
   0x1   :  { %1332 = sst [smem:[#allocation20_spill]] %s1313_s1 }
   0x2   :  { %1333 = sst [smem:[#allocation21_spill]] %s1314_s2 }
   0x3   :  { %9 = vsyncpa [#allocation5], 0 }
   0x4   :  { %10 = vsyncpa [#allocation3], 0 }
   0x5   :  { %12 = vsyncpa [#allocation3 + $0x1], 0 }
   0x6   :  { %13 = vsyncpa [#allocation8], 0 }
   0x7   :  { %15 = vsyncpa [#allocation8 + $0x1], 0 }
   0x8   :  { %16 = vsyncpa [#allocation4], 0 }
   0x9   :  { %18 = vsyncpa [#allocation4 + $0x1], 0  ;;  %s967_s15 = smov 0   ;;  %s969_s16 = smov 0  }
   0xa   :  { %s971_s17 = smov 0   ;;  %s973_s18 = smov 0  }
   0xb   :  { %s975_s19 = smov 0   ;;  %s977_s20 = smov 0  }
   0xc LB: > { %1334 = sst [smem:[#allocation15_spill]] %s927_s19  ;;  %s36_s21 = sadd.s32 1, %s927_s19  ;;  %s931_s20 = sphi %s977_s20, %s24_s20   ;;  %s927_s19 = sphi %s975_s19, %s1363_s19   ;;  %s923_s18 = sphi %s973_s18, %s1362_s18   ;;  %s919_s17 = sphi %s971_s17, %s1366_s17   ;;  %s915_s16 = sphi %s969_s16, %s1365_s16   ;;  %s911_s15 = sphi %s967_s15, %s1364_s15  }
   0xd   : > { %1335 = sst [smem:[#allocation16_spill]] %s931_s20  ;;  %s66_s22 = sadd.s32 1, %s919_s17 }
   0xe   : > { %p38_p0 = scmp.ge.s32.totalorder %s36_s21, 2  ;;  %p1317_p1 = scmp.ne.s32.totalorder %s919_s17, %s915_s16 }
   0xf   : > { %p74_p2 = scmp.eq.s32.totalorder %s931_s20, 0  ;;  %p674_p5 = scmp.lt.s32.totalorder %s931_s20, 2 }
  0x10   : > { %s1368_s21 = smov (%p38_p0, %s36_s21), 0  ;;  %s196_s24 = sand.u32 1, %s919_s17  }
  0x11   : > { %1336 = sst [smem:[#allocation17_spill]] %s1368_s21  ;;  %p75_p4 = por %p74_p2, %p1317_p1 }
  0x12   : > { %s61_s23 = ssub.s32 %s927_s19, %s1368_s21  ;;  %s1014_s25 = sshll.u32 %s196_s24, 3 }
  0x13   : > { %p64_p6 = scmp.eq.s32.totalorder %s61_s23, 0  ;;  %s1017_s26 = sshll.u32 %s927_s19, 7 }
  0x14   : > { %p1019_p7 = pnand %p674_p5, %p75_p4  ;;  %s218_s29 = sand.u32 1, %s931_s20  }
  0x15   : > { %s1024_s28 = scalar_select %p64_p6, %s919_s17, %s66_s22  }
  0x16   : > { %s1339_s2 = sld [smem:[#allocation21_spill]]  ;;  %s222_s7 = scalar_lea.vmem [#allocation7], %s1014_s25 }
  0x17   : > { %1338 = sst [smem:[#allocation18_spill]] %s1024_s28  ;;  %s230_s8 = sshll.u32 %s222_s7, 4  ;;  %s1034_s8 = int_to_ptr.vmem [resolvable:$true] %s230_s8 }
  0x18   : > { %s1036_s9 = scalar_lea.sflag [#allocation8], %s218_s29  ;;  %p1042_p9 = pneg %p1019_p7 }
  0x1c   : > { %s1031_s6 = scalar_lea.hbm %s1339_s2, %s1017_s26  ;;  %s743_s14 = scalar_lea.hbm %s1339_s2, 256 }
  0x1d   : > { %s738_s10 = scalar_lea.hbm %s1031_s6, 128  ;;  %p744_p12 = scmp.lt.u32.totalorder %s1031_s6, %s1339_s2 }
  0x1e   : > { %p739_p8 = scmp.ne.s32.totalorder %s1031_s6, %s738_s10  ;;  %p745_p13 = scmp.lt.u32.totalorder %s743_s14, %s738_s10 }
  0x1f   : > { %p747_p2 = scmp.lt.u32.totalorder %s738_s10, %s1031_s6 }
  0x20   : > { %p741_p10 = pnand %p1042_p9, %p739_p8  ;;  %p746_p0 = por %p745_p13, %p744_p12 }
  0x22   : > { %p742_p11 = pneg %p741_p10  ;;  %p748_p4 = por %p747_p2, %p746_p0 }
  0x24   : > { %p749_p5 = pnand %p748_p4, %p742_p11 }
  0x26   : > { %752 = shalt.err (!%p749_p5)
}
  0x27   : > { %s753_s29 = scalar_lea.vmem %s1034_s8, 128  ;;  %s933_s30 = smov [#allocation7]  }
  0x28   : > { %p754_p6 = scmp.ne.s32.totalorder %s1034_s8, %s753_s29  ;;  %s758_s5 = sshll.u32 %s933_s30, 4  ;;  %s759_s5 = int_to_ptr.vmem [resolvable:$false] %s758_s5 }
  0x29   : > { %s760_s7 = scalar_lea.vmem %s759_s5, 256  ;;  %p761_p3 = scmp.lt.s32.totalorder %s1034_s8, %s759_s5 }
  0x2a   : > { %p756_p8 = pnand %p754_p6, %p1042_p9  ;;  %p762_p1 = scmp.lt.s32.totalorder %s760_s7, %s753_s29 }
  0x2c   : > { %p757_p10 = pneg %p756_p8  ;;  %p763_p12 = por %p762_p1, %p761_p3 }
  0x2e   : > { %p764_p13 = pnand %p763_p12, %p757_p10 }
  0x30   : > { %767 = shalt.err (!%p764_p13)
}
  0x31   : > { %s1318_s10 = smov 32   ;;  %s1320_s12 = smov 2  }
  0x32   : > { %665 = dma.hbm_to_vmem [thread:$0]  (!%p1019_p7), %s1031_s6, 128, %s1034_s8, %s1036_s9, %s1318_s10, %s1318_s10, %s1320_s12  }
  0x33   : > { %s1070_s13 = sadd.s32 4294967295, %s931_s20   ;;  %s591_s14 = sadd.s32 4294967294, %s931_s20  }
  0x34   : > { %p79_p1 = scmp.ne.s32.totalorder %s915_s16, %s911_s15  ;;  %p1327_p3 = scmp.eq.s32.totalorder %s1070_s13, 0 }
  0x35   : > { %p161_p11 = scmp.eq.s32.totalorder %s1070_s13, 1  ;;  %p167_p0 = scmp.eq.s32.totalorder %s591_s14, 1 }
  0x36   : > { %p592_p2 = scmp.ge.s32.totalorder %s931_s20, 1  ;;  %p1080_p4 = por %p1327_p3, %p79_p1 }
  0x37   : > { %p1342_p5 = scmp.ne.s32.totalorder %s919_s17, %s915_s16  ;;  %p1091_p8 = por %p167_p0, %p79_p1 }
  0x38   : > { %s1341_s22 = scalar_select %p1080_p4, 1, 0 }
  0x39   : > { %p1087_p6 = por %p161_p11, %p1342_p5  ;;  %p174_p10 = scmp.lt.s32.totalorder %s931_s20, 3 }
  0x3a   : > { %s1344_s8 = scalar_select %p1091_p8, 1, 0 }
  0x3b   : > { %s1343_s6 = scalar_select %p1087_p6, 1, 0 }
  0x3c   : > { %1345 = sst [smem:[#allocation19_spill]] %s1344_s8  ;;  %p1096_p12 = pnand %p592_p2, %p174_p10 }
  0x3d   : > { %s1347_s1 = sld [smem:[#allocation20_spill]]  ;;  %s200_s7 = scalar_lea.vmem [#allocation6], %s1014_s25 }
  0x3e   : > { %s1346_s23 = scalar_select %p1096_p12, 1, 0 }
  0x3f   : > { %p655_p13 = pneg %p1096_p12  ;;  %s208_s14 = sshll.u32 %s200_s7, 4  ;;  %s1109_s14 = int_to_ptr.vmem [resolvable:$true] %s208_s14 }
  0x40   : > { %s1121_s30 = scalar_lea.hbm %s1315_s3, %s1017_s26  ;;  %s1125_s2 = scalar_lea.sflag [#allocation3], %s196_s24 }
  0x41   : > { %p1113_p1 = pnand %p655_p13, %p1327_p3 }
  0x43   : > { %s1104_s5 = scalar_lea.hbm %s1347_s1, %s1017_s26  ;;  %s773_s28 = scalar_lea.hbm %s1347_s1, 256 }
  0x44   : > { %s1348_s10 = scalar_select %p1113_p1, 1, 0 }
  0x45   : > { %s768_s21 = scalar_lea.hbm %s1104_s5, 128  ;;  %p774_p5 = scmp.lt.u32.totalorder %s1104_s5, %s1347_s1 }
  0x46   : > { %p769_p11 = scmp.ne.s32.totalorder %s1104_s5, %s768_s21  ;;  %p775_p10 = scmp.lt.u32.totalorder %s773_s28, %s768_s21 }
  0x47   : > { %p777_p3 = scmp.lt.u32.totalorder %s768_s21, %s1104_s5 }
  0x48   : > { %p771_p0 = pnand %p769_p11, %p1042_p9  ;;  %p776_p13 = por %p775_p10, %p774_p5 }
  0x4a   : > { %p772_p2 = pneg %p771_p0  ;;  %p778_p8 = por %p777_p3, %p776_p13 }
  0x4c   : > { %p779_p6 = pnand %p778_p8, %p772_p2 }
  0x4e   : > { %782 = shalt.err (!%p779_p6)
}
  0x4f   : > { %s783_s24 = scalar_lea.vmem %s1109_s14, 128  ;;  %s936_s19 = smov [#allocation6]  }
  0x50   : > { %p784_p11 = scmp.ne.s32.totalorder %s1109_s14, %s783_s24  ;;  %s788_s26 = sshll.u32 %s936_s19, 4  ;;  %s789_s26 = int_to_ptr.vmem [resolvable:$false] %s788_s26 }
  0x51   : > { %s790_s20 = scalar_lea.vmem %s789_s26, 256  ;;  %p791_p12 = scmp.lt.s32.totalorder %s1109_s14, %s789_s26 }
  0x52   : > { %p786_p0 = pnand %p784_p11, %p1042_p9  ;;  %p792_p1 = scmp.lt.s32.totalorder %s790_s20, %s783_s24 }
  0x54   : > { %p787_p4 = pneg %p786_p0  ;;  %p793_p5 = por %p792_p1, %p791_p12 }
  0x56   : > { %p794_p10 = pnand %p793_p5, %p787_p4 }
  0x58   : > { %797 = shalt.err (!%p794_p10)
}
  0x59   : > { %s1349_s21 = smov 2   ;;  %s1350_s28 = smov 32  }
  0x5a   : > { %662 = dma.hbm_to_vmem [thread:$0]  (!%p1019_p7), %s1104_s5, 128, %s1109_s14, %s1125_s2, %s1350_s28, %s1350_s28, %s1349_s21  }
  0x5b   : > { %s244_s12 = scalar_lea.vmem [#allocation9], %s1014_s25  ;;  %s798_s24 = scalar_lea.hbm %s1312_s0, 16 }
  0x5c   : > { %s252_s8 = sshll.u32 %s244_s12, 4  ;;  %p799_p3 = scmp.ne.s32.totalorder %s1312_s0, %s798_s24  ;;  %s1169_s8 = int_to_ptr.vmem [resolvable:$true] %s252_s8 }
  0x5d   : > { %p1351_p4 = scmp.ne.s32.totalorder %s1348_s10, 0  ;;  %p805_p1 = scmp.lt.u32.totalorder %s798_s24, %s1312_s0 }
  0x5f   : > { %p800_p6 = pneg %p1351_p4 }
  0x61   : > { %p801_p8 = pnand %p800_p6, %p799_p3 }
  0x63   : > { %p802_p12 = pneg %p801_p8 }
  0x65   : > { %p807_p2 = pnand %p805_p1, %p802_p12 }
  0x67   : > { %810 = shalt.err (!%p807_p2)
}
  0x68   : > { %s937_s2 = smov [#allocation2]   ;;  %s811_s14 = scalar_lea.hbm %s1121_s30, 128 }
  0x69   : > { %658 = dma.hbm_to_smem (!%p1351_p4), %s1312_s0, 16, %s937_s2, [#allocation5]  }
  0x6a   : > { %p812_p13 = scmp.ne.s32.totalorder %s1121_s30, %s811_s14  ;;  %s816_s10 = scalar_lea.hbm %s1315_s3, 256 }
  0x6b   : > { %p817_p5 = scmp.lt.u32.totalorder %s1121_s30, %s1315_s3  ;;  %p818_p10 = scmp.lt.u32.totalorder %s816_s10, %s811_s14 }
  0x6c   : > { %p814_p11 = pnand %p812_p13, %p1042_p9  ;;  %p820_p6 = scmp.lt.u32.totalorder %s811_s14, %s1121_s30 }
  0x6d   : > { %p819_p3 = por %p818_p10, %p817_p5 }
  0x6e   : > { %p815_p0 = pneg %p814_p11 }
  0x6f   : > { %p821_p8 = por %p820_p6, %p819_p3 }
  0x71   : > { %p822_p4 = pnand %p821_p8, %p815_p0 }
  0x73   : > { %825 = shalt.err (!%p822_p4)
}
  0x74   : > { %s826_s24 = scalar_lea.vmem %s1169_s8, 128  ;;  %s938_s19 = smov [#allocation9]  }
  0x75   : > { %p827_p12 = scmp.ne.s32.totalorder %s1169_s8, %s826_s24  ;;  %s831_s26 = sshll.u32 %s938_s19, 4  ;;  %s832_s26 = int_to_ptr.vmem [resolvable:$false] %s831_s26 }
  0x76   : > { %s833_s20 = scalar_lea.vmem %s832_s26, 256  ;;  %p834_p13 = scmp.lt.s32.totalorder %s1169_s8, %s832_s26 }
  0x77   : > { %p829_p1 = pnand %p827_p12, %p1042_p9  ;;  %p835_p11 = scmp.lt.s32.totalorder %s833_s20, %s826_s24 }
  0x79   : > { %p830_p2 = pneg %p829_p1  ;;  %p836_p5 = por %p835_p11, %p834_p13 }
  0x7b   : > { %p837_p10 = pnand %p836_p5, %p830_p2 }
  0x7d   : > { %840 = shalt.err (!%p837_p10)
}
  0x7e   : > { %668 = dma.hbm_to_vmem [thread:$0]  (!%p1019_p7), %s1121_s30, 128, %s1169_s8, %s1036_s9, %s1350_s28, %s1350_s28, %s1349_s21  }
  0x7f   : > { %p1352_p9 = scmp.ne.s32.totalorder %s1346_s23, 0 }
  0x80   : > { %p1353_p0 = scmp.eq.s32.totalorder (!%p1352_p9), %s1070_s13, 0 }
  0x81   : > { %264 = sbr.rel (%p1352_p9) target bundleno = 222 (0xde), region = 36 }
  0x88   : > { %894 = dma.done.wait (%p1353_p0), [#allocation5], 16   ;;  %p1354_p3 = pmov %p1353_p0 }
  0x89   : > { %s1203_s11 = sand.u32 1, %s915_s16   ;;  %p1355_p7 = scmp.ne.s32.totalorder %s1341_s22, 0 }
  0x8a   : > { %896 = vsyncadd (%p1354_p3), [#allocation5], 4294967280  ;;  %s1206_s27 = sshll.u32 %s1203_s11, 3  ;;  %s271_s2 = scalar_lea.sflag [#allocation3], %s1203_s11 }
  0x8b   : > { %s1210_s9 = scalar_lea.vmem [#allocation6], %s1206_s27 }
  0x8c   : > { %898 = dma.done.wait (%p1355_p7), %s271_s2, 128  }
  0x8d   : > { %900 = vsyncadd (%p1355_p7), %s271_s2, 4294967168  ;;  %s279_s23 = sand.u32 1, %s1070_s13   ;;  %s1218_s21 = scalar_lea.vmem [#allocation7], %s1206_s27 }
  0x8e   : > { %s280_s30 = scalar_lea.sflag [#allocation8], %s279_s23 }
  0x8f   : > { %902 = dma.done.wait (%p1355_p7), %s280_s30, 256  }
  0x90   : > { %904 = vsyncadd (%p1355_p7), %s280_s30, 4294967040  ;;  %s1225_s28 = scalar_lea.vmem [#allocation9], %s1206_s27 }
  0x91   : > { %297 = sfence }
  0x92   : > { %s328_s8 = sld [smem:[#allocation2]]  ;;  %s610_s13 = sld [smem:[#allocation2 + $0x1]]  ;;  %v1228_v0 = vld [vmem:[%s1210_s9] sm:$0x3]  ;;  %v613_v1 = vld [vmem:[%s1210_s9 + $0x2] sm:$0x3] }
  0x93   : > { %s611_s25 = sld [smem:[#allocation2 + $0x2]]  ;;  %s612_s5 = sld [smem:[#allocation2 + $0x3]]  ;;  %v1232_v2 = vld [vmem:[%s1218_s21] sm:$0x3]  ;;  %v614_v3 = vld [vmem:[%s1210_s9 + $0x4] sm:$0x3] }
  0x94   : > { %v615_v4 = vld [vmem:[%s1210_s9 + $0x6] sm:$0x3]  ;;  %v616_v5 = vld [vmem:[%s1218_s21 + $0x2] sm:$0x3]  ;;  %v617_v7 = vld [vmem:[%s1218_s21 + $0x4] sm:$0x3] }
  0x95   : > { %v618_v8 = vld [vmem:[%s1218_s21 + $0x6] sm:$0x3]  ;;  %v364_v9 = vld [vmem:[%s1225_s28] sm:$0x3]  ;;  %v619_v14 = vld [vmem:[%s1225_s28 + $0x2] sm:$0x3] }
  0x96   : > { %v620_v15 = vld [vmem:[%s1225_s28 + $0x4] sm:$0x3]  ;;  %v621_v24 = vld [vmem:[%s1225_s28 + $0x6] sm:$0x3]  ;;  %v622_v51 = vld [vmem:[%s1210_s9 + $0x2] sm:$0x3] }
  0x97   : > { %v623_v52 = vld [vmem:[%s1218_s21 + $0x2] sm:$0x3]  ;;  %v624_v56 = vld [vmem:[%s1225_s28 + $0x2] sm:$0x3]  ;;  %v626_v57 = vld [vmem:[%s1210_s9 + $0x4] sm:$0x3] }
  0x98   : > { %v333_v6 = vstv %s328_s8  ;;  %v337_v11 = vstv %s610_s13  ;;  %v627_v58 = vld [vmem:[%s1218_s21 + $0x4] sm:$0x3]  ;;  %v628_v59 = vld [vmem:[%s1225_s28 + $0x4] sm:$0x3]  ;;  %s327_s22 = scalar_lea.vmem [#allocation10], %s1206_s27  ;;  %s642_s1 = sshll.u32 %s923_s18, 7 }
  0x99   : > { %v334_v10 = vmul.f32 %v333_v6, %v1228_v0  ;;  %v342_v12 = vstv %s611_s25  ;;  %v351_v13 = vmul.f32 %v1232_v2, %v333_v6  ;;  %v338_v16 = vmul.f32 %v613_v1, %v337_v11  ;;  %v630_v60 = vld [vmem:[%s1210_s9 + $0x6] sm:$0x3]  ;;  %v631_v61 = vld [vmem:[%s1218_s21 + $0x6] sm:$0x3]  ;;  %s446_s14 = sshll.u32 %s327_s22, 4  ;;  %s1263_s29 = scalar_lea.hbm %s1316_s4, %s642_s1  ;;  %s1258_s14 = int_to_ptr.vmem [resolvable:$true] %s446_s14 }
  0x9a   : > { %v343_v17 = vmul.f32 %v614_v3, %v342_v12  ;;  %v347_v18 = vstv %s612_s5  ;;  %v354_v19 = vmul.f32 %v616_v5, %v337_v11  ;;  %v358_v21 = vmul.f32 %v617_v7, %v342_v12  ;;  %s432_s18 = scalar_lea.sflag [#allocation4], %s1203_s11  ;;  %s841_s7 = scalar_lea.vmem %s1258_s14, 128 }
  0x9b   : > { %v348_v20 = vmul.f32 %v615_v4, %v347_v18  ;;  %v362_v22 = vmul.f32 %v618_v8, %v347_v18  ;;  %v365_v23 = vmul.f32 %v364_v9, %v333_v6  ;;  %v339_v25 = vadd.f32 %v338_v16, %v334_v10  ;;  %v632_v4 = vld [vmem:[%s1225_s28 + $0x6] sm:$0x3]  ;;  %p842_p6 = scmp.ne.s32.totalorder %s1258_s14, %s841_s7  ;;  %p1356_p8 = scmp.ne.s32.totalorder %s1343_s6, 0 }
  0x9c   : > { %v355_v26 = vadd.f32 %v354_v19, %v351_v13  ;;  %v368_v27 = vmul.f32 %v619_v14, %v337_v11  ;;  %v372_v28 = vmul.f32 %v620_v15, %v342_v12  ;;  %v376_v32 = vmul.f32 %v621_v24, %v347_v18  ;;  %s939_s24 = smov [#allocation10]  }
  0x9d   : > { %v344_v29 = vadd.f32 %v343_v17, %v339_v25  ;;  %p843_p4 = pnand %p842_p6, %p1356_p8  ;;  %s845_s19 = sshll.u32 %s939_s24, 4  ;;  %s846_s19 = int_to_ptr.vmem [resolvable:$false] %s845_s19 }
  0x9e   : > { %v359_v30 = vadd.f32 %v358_v21, %v355_v26  ;;  %v369_v31 = vadd.f32 %v368_v27, %v365_v23  ;;  %s847_s26 = scalar_lea.vmem %s846_s19, 256  ;;  %p848_p1 = scmp.lt.s32.totalorder %s1258_s14, %s846_s19 }
  0x9f   : > { %v349_v33 = vadd.f32 %v348_v20, %v344_v29  ;;  %p844_p12 = pneg %p843_p4  ;;  %p849_p2 = scmp.lt.s32.totalorder %s847_s26, %s841_s7 }
  0xa0   : > { %v363_v34 = vadd.f32 %v362_v22, %v359_v30  ;;  %v373_v35 = vadd.f32 %v372_v28, %v369_v31 }
  0xa1   : > { %p850_p13 = por %p849_p2, %p848_p1 }
  0xa2   : > { %v377_v36 = vadd.f32 %v376_v32, %v373_v35  ;;  %v378_v37 = vmax.f32 %v349_v33, %v363_v34 }
  0xa3   : > { %p851_p11 = pnand %p850_p13, %p844_p12 }
  0xa4   : > { %v379_v38 = vmax.f32 %v378_v37, %v377_v36 }
  0xa6   : > { %v380_v39 = vsub.f32 %v349_v33, %v379_v38  ;;  %v383_v40 = vsub.f32 %v363_v34, %v379_v38  ;;  %v386_v41 = vsub.f32 %v377_v36, %v379_v38 }
  0xa8   : > { %v381_v42 = vmul.f32 1.442695, %v380_v39  ;;  %v384_v43 = vmul.f32 1.442695, %v383_v40  ;;  %v387_v44 = vmul.f32 1.442695, %v386_v41 }
  0xaa   : > { %730 = vpow2.f32 %v381_v42 }
  0xab   : > { %732 = vpow2.f32 %v384_v43 }
  0xac   : > { %734 = vpow2.f32 %v387_v44 }
  0xb4   : > { %v731_v45 = vpop.eup %730 }
  0xb5   : > { %v733_v46 = vpop.eup %732 }
  0xb6   : > { %v735_v47 = vpop.eup %734  ;;  %v389_v48 = vadd.f32 %v733_v46, %v731_v45 }
  0xb8   : > { %v390_v49 = vadd.f32 %v735_v47, %v389_v48 }
  0xba   : > { %736 = vrcp.f32 %v390_v49 }
  0xc4   : > { %v737_v50 = vpop.eup %736 }
  0xc5   : > { %v392_v53 = vmul.f32 %v737_v50, %v731_v45  ;;  %v393_v54 = vmul.f32 %v737_v50, %v733_v46  ;;  %v394_v55 = vmul.f32 %v737_v50, %v735_v47 }
  0xc7   : > { %v395_v62 = vmul.f32 %v392_v53, %v1228_v0  ;;  %v396_v63 = vmul.f32 %v393_v54, %v1232_v2  ;;  %v398_v1 = vmul.f32 %v394_v55, %v364_v9  ;;  %v402_v3 = vmul.f32 %v622_v51, %v392_v53 }
  0xc8   : > { %v404_v5 = vmul.f32 %v623_v52, %v393_v54  ;;  %v407_v6 = vmul.f32 %v624_v56, %v394_v55  ;;  %v412_v7 = vmul.f32 %v626_v57, %v392_v53  ;;  %v414_v8 = vmul.f32 %v627_v58, %v393_v54 }
  0xc9   : > { %v397_v10 = vadd.f32 %v396_v63, %v395_v62  ;;  %v417_v11 = vmul.f32 %v628_v59, %v394_v55  ;;  %v422_v12 = vmul.f32 %v630_v60, %v392_v53  ;;  %v424_v13 = vmul.f32 %v631_v61, %v393_v54 }
  0xca   : > { %v405_v14 = vadd.f32 %v404_v5, %v402_v3  ;;  %v415_v15 = vadd.f32 %v414_v8, %v412_v7  ;;  %v427_v0 = vmul.f32 %v632_v4, %v394_v55 }
  0xcb   : > { %v399_v2 = vadd.f32 %v398_v1, %v397_v10  ;;  %v425_v9 = vadd.f32 %v424_v13, %v422_v12 }
  0xcc   : > { %v408_v16 = vadd.f32 %v407_v6, %v405_v14  ;;  %v418_v17 = vadd.f32 %v417_v11, %v415_v15 }
  0xcd   : > { %400 = vst [vmem:[%s327_s22] sm:$0x3] %v399_v2  ;;  %v428_v18 = vadd.f32 %v427_v0, %v425_v9 }
  0xce   : > { %625 = vst [vmem:[%s327_s22 + $0x2] sm:$0x3] %v408_v16  ;;  %629 = vst [vmem:[%s327_s22 + $0x4] sm:$0x3] %v418_v17 }
  0xcf   : > { %633 = vst [vmem:[%s327_s22 + $0x6] sm:$0x3] %v428_v18 }
  0xd0   : > { %854 = shalt.err (!%p851_p11)
}
  0xd1   : > { %s855_s20 = scalar_lea.hbm %s1263_s29, 128  ;;  %s859_s9 = scalar_lea.hbm %s1316_s4, 256 }
  0xd2   : > { %p856_p5 = scmp.ne.s32.totalorder %s1263_s29, %s855_s20  ;;  %p860_p0 = scmp.lt.u32.totalorder %s1263_s29, %s1316_s4 }
  0xd3   : > { %p861_p3 = scmp.lt.u32.totalorder %s859_s9, %s855_s20  ;;  %p863_p6 = scmp.lt.u32.totalorder %s855_s20, %s1263_s29 }
  0xd4   : > { %p857_p10 = pnand %p856_p5, %p1356_p8 }
  0xd5   : > { %p862_p7 = por %p861_p3, %p860_p0 }
  0xd6   : > { %p858_p9 = pneg %p857_p10 }
  0xd7   : > { %p864_p4 = por %p863_p6, %p862_p7 }
  0xd9   : > { %p865_p12 = pnand %p864_p4, %p858_p9 }
  0xdb   : > { %868 = shalt.err (!%p865_p12)
}
  0xdc   : > { %s940_s21 = smov 32   ;;  %s941_s28 = smov 2  }
  0xdd   : > { %653 = dma.vmem_to_hbm [thread:$0]  (%p1356_p8), %s1258_s14, 128, %s1263_s29, %s432_s18, %s940_s21, %s940_s21, %s941_s28  }
  0xde PF: > { %s1357_s8 = sld [smem:[#allocation19_spill]]  ;;  %s1358_s13 = sld [smem:[#allocation16_spill]] }
  0xdf   : > { %s461_s25 = sand.u32 1, %s911_s15  }
  0xe0   : > { %s462_s5 = scalar_lea.sflag [#allocation4], %s461_s25 }
  0xe4   : > { %p1359_p1 = scmp.ne.s32.totalorder %s1357_s8, 0  ;;  %p1360_p2 = scmp.ge.s32.totalorder %s1358_s13, 2 }
  0xe6   : > { %p670_p13 = pnand %p1360_p2, %p1359_p1 }
  0xe8   : > { %906 = dma.done.wait (!%p670_p13), %s462_s5, 128  }
  0xe9   : > { %908 = vsyncadd (!%p670_p13), %s462_s5, 4294967168  ;;  %s24_s20 = sadd.s32 1, %s1358_s13   ;;  %s1361_s22 = sld [smem:[#allocation18_spill]] }
  0xea   : > { %p21_p11 = scmp.ge.s32.totalorder %s24_s20, 4   ;;  %s1362_s18 = sld [smem:[#allocation15_spill]] }
  0xeb   : > { %s1363_s19 = sld [smem:[#allocation17_spill]]  ;;  %s1364_s15 = smov %s915_s16 }
  0xec   : > { %s1365_s16 = smov %s919_s17  ;;  %23 = sbr.rel (!%p21_p11) target bundleno = 12 (0xc), region = 122 }
  0xef   : > { %s1366_s17 = smov %s1361_s22 }
  0xf3   :  { %467 = vsyncpa [#allocation3], 1 }
  0xf4   :  { %469 = vsyncpa [#allocation3 + $0x1], 1 }
  0xf5   :  { %470 = vsyncpa [#allocation8], 1 }
  0xf6   :  { %472 = vsyncpa [#allocation8 + $0x1], 1 }
  0xf7   :  { %473 = vsyncpa [#allocation4], 1 }
  0xf8   :  { %475 = vsyncpa [#allocation4 + $0x1], 1 }
  0xf9   :  { %476 = vsyncpa [#allocation5], 1 }
  0xfa   :  { %478 = vsyncpa [#allocation5 + $0x1], 1 }

</bundles_post_ra>
